<compile_context>
chip_gen: v7x
topology: tpu7x:2x2x1
jax: 0.10.0
libtpu: 0.0.40
codegen_flags: <defaults>
</compile_context>

<pallas_src>
import functools

import jax
import jax.numpy as jnp
from jax.experimental import pallas as pl
from jax.experimental.pallas import tpu as pltpu


def _elr_kernel(logits_ref, labels_ref, tgt_ref, out_ref, newtgt_ref, acc_ref,
                *, beta, lambda_elr, batch_size, block_rows):
    # logits_ref: VMEM (TB, C) native dtype   -- logits tile
    # labels_ref: VMEM (TB, 1) int32          -- labels column
    # tgt_ref:    VMEM (TB, C) f32            -- gathered targets[indices] rows
    # out_ref:    SMEM (3,)    f32            -- [total, ce, elr]
    # newtgt_ref: VMEM (TB, C)                -- updated target rows
    # acc_ref:    SMEM (2,)    f32 scratch    -- [sum_ce, sum_elr] accumulators
    pid = pl.program_id(0)

    @pl.when(pid == 0)
    def _init():
        acc_ref[0] = 0.0
        acc_ref[1] = 0.0

    logits = logits_ref[...].astype(jnp.float32)        # [TB, C]
    labels = labels_ref[...]                            # [TB, 1] int32
    tgt = tgt_ref[...].astype(jnp.float32)               # [TB, C]
    tb, c = logits.shape

    # ---- single softmax pass, reused by CE and ELR ----
    m = jnp.max(logits, axis=1, keepdims=True)           # [TB, 1]
    e = jnp.exp(logits - m)                               # [TB, C]  (one EUP pass)
    s = jnp.sum(e, axis=1, keepdims=True)                 # [TB, 1]
    lse = m + jnp.log(s)                                  # [TB, 1]
    probs = e / s                                         # [TB, C]

    # ---- cross entropy (mean over batch, accumulated as a sum here) ----
    col = jax.lax.broadcasted_iota(jnp.int32, (tb, c), 1)
    y_onehot = (col == labels).astype(jnp.float32)
    correct = jnp.sum(logits * y_onehot, axis=1, keepdims=True)
    ce_row = lse - correct                                # [TB, 1]

    # ---- EMA target update + ELR term ----
    new_tgt = beta * tgt + (1.0 - beta) * probs           # [TB, C]
    dot = jnp.sum(probs * new_tgt, axis=1, keepdims=True) # [TB, 1]
    elr_row = -jnp.log(jnp.clip(1.0 - dot, 1e-8, 1.0))    # [TB, 1]

    # mask rows of the final partial tile (padding rows contribute 0)
    row = pid * block_rows + jax.lax.broadcasted_iota(jnp.int32, (tb, 1), 0)
    valid = row < batch_size
    acc_ref[0] += jnp.sum(jnp.where(valid, ce_row, 0.0))
    acc_ref[1] += jnp.sum(jnp.where(valid, elr_row, 0.0))

    # emit updated target rows (buffer update made explicit)
    newtgt_ref[...] = new_tgt.astype(newtgt_ref.dtype)

    @pl.when(pid == pl.num_programs(0) - 1)
    def _finalize():
        inv_b = 1.0 / float(batch_size)
        ce = acc_ref[0] * inv_b
        elr = acc_ref[1] * inv_b
        out_ref[0] = ce + lambda_elr * elr
        out_ref[1] = ce
        out_ref[2] = elr


def elr_loss(logits, labels, indices, targets, *, beta=0.9, lambda_elr=1.0,
             block_rows=None):
    """Returns (total_loss, ce_loss, elr_loss, updated_targets).

    logits: [B, C] (f32 or bf16), labels: [B] int, indices: [B] int,
    targets: [N, C] f32 EMA buffer (the module's registered buffer).
    """
    B, C = logits.shape
    labels2 = labels.astype(jnp.int32).reshape(B, 1)
    # gather of the EMA buffer rows (arbitrary indices) stays in the wrapper;
    # the kernel streams the gathered rows and emits the updated rows.
    tgt_rows = jnp.take(targets, indices, axis=0).astype(jnp.float32)

    if block_rows is None:
        # keep ~3 (TB, C) slabs x 2 pipeline buffers well under the scoped VMEM
        # limit on every generation (incl. v7x): TB*C <= ~1M f32 elements,
        # capped at 1024 rows (measured ~85% of HBM roofline at 512-1024 rows).
        budget_elems = 1 << 20
        block_rows = max(8, min(1024, (budget_elems // max(C, 1)) // 8 * 8))
    block_rows = min(block_rows, ((B + 7) // 8) * 8)
    block_rows = max(8, (block_rows // 8) * 8)
    grid = (pl.cdiv(B, block_rows),)

    kernel = functools.partial(
        _elr_kernel, beta=float(beta), lambda_elr=float(lambda_elr),
        batch_size=B, block_rows=block_rows)

    cost = pl.CostEstimate(
        flops=12 * B * C,
        transcendentals=B * C + 2 * B,
        bytes_accessed=B * C * (logits.dtype.itemsize + 2 * 4) + B * C * 4 + B * 8 + 16,
    )

    out_scalars, new_rows = pl.pallas_call(
        kernel,
        out_shape=(
            jax.ShapeDtypeStruct((3,), jnp.float32),            # [total, ce, elr]
            jax.ShapeDtypeStruct((B, C), targets.dtype),        # updated target rows
        ),
        grid=grid,
        in_specs=[
            pl.BlockSpec((block_rows, C), lambda i: (i, 0)),    # logits (native dtype)
            pl.BlockSpec((block_rows, 1), lambda i: (i, 0)),    # labels column
            pl.BlockSpec((block_rows, C), lambda i: (i, 0)),    # gathered target rows
        ],
        out_specs=(
            pl.BlockSpec((3,), lambda i: (0,),
                         memory_space=pltpu.MemorySpace.SMEM),
            pl.BlockSpec((block_rows, C), lambda i: (i, 0)),
        ),
        scratch_shapes=[pltpu.SMEM((2,), jnp.float32)],
        compiler_params=pltpu.CompilerParams(
            dimension_semantics=("arbitrary",),
            vmem_limit_bytes=32 * 1024 * 1024,
        ),
        cost_estimate=cost,
    )(logits, labels2, tgt_rows)

    # scatter the EMA update back (PyTorch: self.targets[indices] = new_rows)
    # TODO(synk): with duplicate indices PyTorch's in-place write is
    # last-write-wins and re-reads the written row; here rows are per-sample.
    new_targets = targets.at[indices].set(new_rows.astype(targets.dtype))
    return out_scalars[0], out_scalars[1], out_scalars[2], new_targets


def elr_loss_ref(logits, labels, indices, targets, beta=0.9, lambda_elr=1.0):
    """Pure-JAX reference mirroring the PyTorch forward."""
    logits = logits.astype(jnp.float32)
    logp = jax.nn.log_softmax(logits, axis=1)
    ce = -jnp.mean(
        jnp.take_along_axis(logp, labels[:, None].astype(jnp.int32), axis=1)[:, 0])
    probs = jax.nn.softmax(logits, axis=1)
    new_rows = beta * targets[indices].astype(jnp.float32) + (1.0 - beta) * probs
    dot = jnp.sum(probs * new_rows, axis=1)
    elr = jnp.mean(-jnp.log(jnp.clip(1.0 - dot, 1e-8, 1.0)))
    new_targets = targets.at[indices].set(new_rows.astype(targets.dtype))
    return ce + lambda_elr * elr, ce, elr, new_targets


if __name__ == "__main__":
    num_samples, B, C = 64, 20, 32
    beta, lambda_elr = 0.9, 1.0

    key = jax.random.PRNGKey(0)
    k1, k2, k3 = jax.random.split(key, 3)
    logits = jax.random.normal(k1, (B, C), dtype=jnp.float32)
    labels = jax.random.randint(k2, (B,), 0, C, dtype=jnp.int32)
    indices = jax.random.permutation(k3, num_samples)[:B].astype(jnp.int32)
    targets = jnp.full((num_samples, C), 1.0 / C, dtype=jnp.float32)

    # force small batch tiles so the demo exercises the multi-step grid,
    # the SMEM accumulator, and the masked partial last tile (20 = 2*8 + 4).
    total, ce, elr, new_tgts = elr_loss(
        logits, labels, indices, targets,
        beta=beta, lambda_elr=lambda_elr, block_rows=8)
    jax.block_until_ready(total)

    rt, rce, relr, rtgts = elr_loss_ref(
        logits, labels, indices, targets, beta=beta, lambda_elr=lambda_elr)
    assert jnp.allclose(total, rt, rtol=1e-4, atol=1e-5), (total, rt)
    assert jnp.allclose(ce, rce, rtol=1e-4, atol=1e-5), (ce, rce)
    assert jnp.allclose(elr, relr, rtol=1e-4, atol=1e-5), (elr, relr)
    assert jnp.allclose(new_tgts, rtgts, rtol=1e-4, atol=1e-6)

    print("KERNEL_OK")
</pallas_src>

<mosaic_0001>
module attributes {stable_mosaic.version = 11 : i64} {
  func.func @_elr_kernel(%arg0: i32, %arg1: memref<8x32xf32, #tpu.memory_space<vmem>>, %arg2: memref<8x1xi32, #tpu.memory_space<vmem>>, %arg3: memref<8x32xf32, #tpu.memory_space<vmem>>, %arg4: memref<3xf32, #tpu.memory_space<smem>>, %arg5: memref<8x32xf32, #tpu.memory_space<vmem>>, %arg6: memref<2xf32, #tpu.memory_space<smem>>) attributes {dimension_semantics = [#tpu.dimension_semantics<arbitrary>], iteration_bounds = array<i64: 3>, scalar_prefetch = 0 : i64, scratch_operands = 1 : i64, tpu.core_type = #tpu.core_type<tc>, window_params = [{transform_indices = @transform_0, window_bounds = array<i64: 8, 32>}, {transform_indices = @transform_1, window_bounds = array<i64: 8, 1>}, {transform_indices = @transform_2, window_bounds = array<i64: 8, 32>}, {transform_indices = @transform_3, window_bounds = array<i64: 3>}, {transform_indices = @transform_4, window_bounds = array<i64: 8, 32>}]} {
    %c0_i32 = arith.constant 0 : i32
    %0 = arith.cmpi eq, %arg0, %c0_i32 : i32
    %1 = arith.extui %0 : i1 to i32
    %c0_i32_0 = arith.constant 0 : i32
    %2 = arith.cmpi ne, %1, %c0_i32_0 : i32
    scf.if %2 {
      %cst_25 = arith.constant 0.000000e+00 : f32
      %c0_26 = arith.constant 0 : index
      %71 = memref.load %arg6[%c0_26] : memref<2xf32, #tpu.memory_space<smem>>
      memref.store %cst_25, %arg6[%c0_26] : memref<2xf32, #tpu.memory_space<smem>>
      %cst_27 = arith.constant 0.000000e+00 : f32
      %c1_28 = arith.constant 1 : index
      %72 = memref.load %arg6[%c1_28] : memref<2xf32, #tpu.memory_space<smem>>
      memref.store %cst_27, %arg6[%c1_28] : memref<2xf32, #tpu.memory_space<smem>>
    } else {
    }
    %c0 = arith.constant 0 : index
    %c0_1 = arith.constant 0 : index
    %3 = vector.load %arg1[%c0, %c0_1] : memref<8x32xf32, #tpu.memory_space<vmem>>, vector<8x32xf32>
    %c0_2 = arith.constant 0 : index
    %c0_3 = arith.constant 0 : index
    %4 = vector.load %arg2[%c0_2, %c0_3] : memref<8x1xi32, #tpu.memory_space<vmem>>, vector<8x1xi32>
    %c0_4 = arith.constant 0 : index
    %c0_5 = arith.constant 0 : index
    %5 = vector.load %arg3[%c0_4, %c0_5] : memref<8x32xf32, #tpu.memory_space<vmem>>, vector<8x32xf32>
    %cst = arith.constant dense<0xFF800000> : vector<8xf32>
    %6 = vector.multi_reduction <maximumf>, %3, %cst [1] : vector<8x32xf32> to vector<8xf32>
    %7 = vector.shape_cast %6 : vector<8xf32> to vector<8x1xf32>
    %8 = vector.broadcast %7 : vector<8x1xf32> to vector<8x32xf32>
    %9 = arith.subf %3, %8 : vector<8x32xf32>
    %10 = math.exp %9 : vector<8x32xf32>
    %cst_6 = arith.constant dense<0.000000e+00> : vector<8xf32>
    %11 = vector.multi_reduction <add>, %10, %cst_6 [1] : vector<8x32xf32> to vector<8xf32>
    %12 = vector.shape_cast %11 : vector<8xf32> to vector<8x1xf32>
    %13 = math.log %12 : vector<8x1xf32>
    %14 = arith.addf %7, %13 : vector<8x1xf32>
    %15 = vector.broadcast %12 : vector<8x1xf32> to vector<8x32xf32>
    %16 = arith.divf %10, %15 : vector<8x32xf32>
    %17 = tpu.iota {dimensions = array<i32: 1>} : vector<8x32xi32>
    %18 = vector.broadcast %4 : vector<8x1xi32> to vector<8x32xi32>
    %19 = arith.cmpi eq, %17, %18 : vector<8x32xi32>
    %20 = arith.extui %19 : vector<8x32xi1> to vector<8x32xi32>
    %21 = arith.sitofp %20 : vector<8x32xi32> to vector<8x32xf32>
    %22 = arith.mulf %3, %21 : vector<8x32xf32>
    %cst_7 = arith.constant dense<0.000000e+00> : vector<8xf32>
    %23 = vector.multi_reduction <add>, %22, %cst_7 [1] : vector<8x32xf32> to vector<8xf32>
    %24 = vector.shape_cast %23 : vector<8xf32> to vector<8x1xf32>
    %25 = arith.subf %14, %24 : vector<8x1xf32>
    %cst_8 = arith.constant 0.899999976 : f32
    %26 = vector.broadcast %cst_8 : f32 to vector<8x32xf32>
    %27 = arith.mulf %26, %5 : vector<8x32xf32>
    %cst_9 = arith.constant 1.000000e-01 : f32
    %28 = vector.broadcast %cst_9 : f32 to vector<8x32xf32>
    %29 = arith.mulf %28, %16 : vector<8x32xf32>
    %30 = arith.addf %27, %29 : vector<8x32xf32>
    %31 = arith.mulf %16, %30 : vector<8x32xf32>
    %cst_10 = arith.constant dense<0.000000e+00> : vector<8xf32>
    %32 = vector.multi_reduction <add>, %31, %cst_10 [1] : vector<8x32xf32> to vector<8xf32>
    %33 = vector.shape_cast %32 : vector<8xf32> to vector<8x1xf32>
    %cst_11 = arith.constant 1.000000e+00 : f32
    %34 = vector.broadcast %cst_11 : f32 to vector<8x1xf32>
    %35 = arith.subf %34, %33 : vector<8x1xf32>
    %cst_12 = arith.constant 9.99999993E-9 : f32
    %cst_13 = arith.constant 1.000000e+00 : f32
    %36 = vector.broadcast %cst_12 : f32 to vector<8x1xf32>
    %37 = arith.maximumf %36, %35 : vector<8x1xf32>
    %38 = vector.broadcast %cst_13 : f32 to vector<8x1xf32>
    %39 = arith.minimumf %38, %37 : vector<8x1xf32>
    %40 = math.log %39 : vector<8x1xf32>
    %cst_14 = arith.constant 0.000000e+00 : f32
    %41 = vector.broadcast %cst_14 : f32 to vector<8x1xf32>
    %42 = arith.subf %41, %40 : vector<8x1xf32>
    %c8_i32 = arith.constant 8 : i32
    %43 = arith.muli %arg0, %c8_i32 : i32
    %44 = tpu.iota {dimensions = array<i32: 0>} : vector<8x1xi32>
    %45 = vector.broadcast %43 : i32 to vector<8x1xi32>
    %46 = arith.addi %45, %44 : vector<8x1xi32>
    %c20_i32 = arith.constant 20 : i32
    %47 = vector.broadcast %c20_i32 : i32 to vector<8x1xi32>
    %48 = arith.cmpi slt, %46, %47 : vector<8x1xi32>
    %c0_15 = arith.constant 0 : index
    %49 = memref.load %arg6[%c0_15] : memref<2xf32, #tpu.memory_space<smem>>
    %cst_16 = arith.constant 0.000000e+00 : f32
    %50 = vector.broadcast %cst_16 : f32 to vector<8x1xf32>
    %51 = arith.select %48, %25, %50 : vector<8x1xi1>, vector<8x1xf32>
    %52 = vector.shape_cast %51 : vector<8x1xf32> to vector<1x8x1xf32>
    %cst_17 = arith.constant dense<0.000000e+00> : vector<1xf32>
    %53 = vector.multi_reduction <add>, %52, %cst_17 [1, 2] : vector<1x8x1xf32> to vector<1xf32>
    %54 = vector.shape_cast %53 : vector<1xf32> to vector<1x1x1xf32>
    %55 = vector.extract %54[0, 0, 0] : f32 from vector<1x1x1xf32>
    %56 = arith.addf %49, %55 : f32
    %c0_18 = arith.constant 0 : index
    %57 = memref.load %arg6[%c0_18] : memref<2xf32, #tpu.memory_space<smem>>
    memref.store %56, %arg6[%c0_18] : memref<2xf32, #tpu.memory_space<smem>>
    %c1 = arith.constant 1 : index
    %58 = memref.load %arg6[%c1] : memref<2xf32, #tpu.memory_space<smem>>
    %cst_19 = arith.constant 0.000000e+00 : f32
    %59 = vector.broadcast %cst_19 : f32 to vector<8x1xf32>
    %60 = arith.select %48, %42, %59 : vector<8x1xi1>, vector<8x1xf32>
    %61 = vector.shape_cast %60 : vector<8x1xf32> to vector<1x8x1xf32>
    %cst_20 = arith.constant dense<0.000000e+00> : vector<1xf32>
    %62 = vector.multi_reduction <add>, %61, %cst_20 [1, 2] : vector<1x8x1xf32> to vector<1xf32>
    %63 = vector.shape_cast %62 : vector<1xf32> to vector<1x1x1xf32>
    %64 = vector.extract %63[0, 0, 0] : f32 from vector<1x1x1xf32>
    %65 = arith.addf %58, %64 : f32
    %c1_21 = arith.constant 1 : index
    %66 = memref.load %arg6[%c1_21] : memref<2xf32, #tpu.memory_space<smem>>
    memref.store %65, %arg6[%c1_21] : memref<2xf32, #tpu.memory_space<smem>>
    %c0_22 = arith.constant 0 : index
    %c0_23 = arith.constant 0 : index
    %67 = vector.load %arg5[%c0_22, %c0_23] : memref<8x32xf32, #tpu.memory_space<vmem>>, vector<8x32xf32>
    tpu.vector_store %arg5[%c0_22, %c0_23], %30 {strides = array<i32>} : memref<8x32xf32, #tpu.memory_space<vmem>>, vector<8x32xf32>,
    %c2_i32 = arith.constant 2 : i32
    %68 = arith.cmpi eq, %arg0, %c2_i32 : i32
    %69 = arith.extui %68 : i1 to i32
    %c0_i32_24 = arith.constant 0 : i32
    %70 = arith.cmpi ne, %69, %c0_i32_24 : i32
    scf.if %70 {
      %c0_25 = arith.constant 0 : index
      %71 = memref.load %arg6[%c0_25] : memref<2xf32, #tpu.memory_space<smem>>
      %cst_26 = arith.constant 5.000000e-02 : f32
      %72 = arith.mulf %71, %cst_26 : f32
      %c1_27 = arith.constant 1 : index
      %73 = memref.load %arg6[%c1_27] : memref<2xf32, #tpu.memory_space<smem>>
      %cst_28 = arith.constant 5.000000e-02 : f32
      %74 = arith.mulf %73, %cst_28 : f32
      %cst_29 = arith.constant 1.000000e+00 : f32
      %75 = arith.mulf %cst_29, %74 : f32
      %76 = arith.addf %72, %75 : f32
      %c0_30 = arith.constant 0 : index
      %77 = memref.load %arg4[%c0_30] : memref<3xf32, #tpu.memory_space<smem>>
      memref.store %76, %arg4[%c0_30] : memref<3xf32, #tpu.memory_space<smem>>
      %c1_31 = arith.constant 1 : index
      %78 = memref.load %arg4[%c1_31] : memref<3xf32, #tpu.memory_space<smem>>
      memref.store %72, %arg4[%c1_31] : memref<3xf32, #tpu.memory_space<smem>>
      %c2 = arith.constant 2 : index
      %79 = memref.load %arg4[%c2] : memref<3xf32, #tpu.memory_space<smem>>
      memref.store %74, %arg4[%c2] : memref<3xf32, #tpu.memory_space<smem>>
    } else {
    }
    return
  }
  func.func @transform_0(%arg0: i32) -> (i32, i32) {
    %c0_i32 = arith.constant 0 : i32
    %c0_i32_0 = arith.constant 0 : i32
    return %arg0, %c0_i32 : i32, i32
  }
  func.func @transform_1(%arg0: i32) -> (i32, i32) {
    %c0_i32 = arith.constant 0 : i32
    %c0_i32_0 = arith.constant 0 : i32
    return %arg0, %c0_i32 : i32, i32
  }
  func.func @transform_2(%arg0: i32) -> (i32, i32) {
    %c0_i32 = arith.constant 0 : i32
    %c0_i32_0 = arith.constant 0 : i32
    return %arg0, %c0_i32 : i32, i32
  }
  func.func @transform_3(%arg0: i32) -> i32 {
    %c0_i32 = arith.constant 0 : i32
    %c0_i32_0 = arith.constant 0 : i32
    return %c0_i32 : i32
  }
  func.func @transform_4(%arg0: i32) -> (i32, i32) {
    %c0_i32 = arith.constant 0 : i32
    %c0_i32_0 = arith.constant 0 : i32
    return %arg0, %c0_i32 : i32, i32
  }
}

</mosaic_0001>

<bundles_post_ra>
// kernel: tpu_custom_call.1
= control target key start
LH: loop header
LB: loop body
LE: loop exit
PB: predicated region body
PF: predicated region fallthrough
CT: control target
= control target key end

     0   :  { %10 = vsyncpa [#allocation4], 0  ;;  %s952_s0 = inlined_call_operand.vmem [shape: f32[20,32], index: 0, kind: input, shape index: {}]   ;;  %s953_s1 = inlined_call_operand.vmem [shape: s32[20,1], index: 1, kind: input, shape index: {}]   ;;  %s954_s2 = inlined_call_operand.hbm [shape: f32[20,32], index: 2, kind: input, shape index: {}]   ;;  %s955_s3 = inlined_call_operand.hbm [shape: f32[3], index: 3, kind: output, shape index: {0}]   ;;  %s956_s4 = inlined_call_operand.hbm [shape: f32[20,32], index: 4, kind: output, shape index: {1}]  }
   0x1   :  { %12 = vsyncpa [#allocation4 + $0x1], 0 }
   0x2   :  { %13 = vsyncpa [#allocation6], 0 }
   0x3   :  { %14 = vsyncpa [#allocation5], 0 }
   0x4   :  { %16 = vsyncpa [#allocation5 + $0x1], 0  ;;  %s728_s15 = smov 0   ;;  %s730_s16 = smov 0  }
   0x5   :  { %s732_s17 = smov 0   ;;  %s734_s18 = smov 0  }
   0x6 LB: > { %s749_s19 = sadd.s32 4294967295, %s695_s18   ;;  %s482_s20 = sadd.s32 4294967294, %s695_s18   ;;  %s695_s18 = sphi %s734_s18, %s981_s18   ;;  %s691_s17 = sphi %s732_s17, %s980_s17   ;;  %s687_s16 = sphi %s730_s16, %s979_s16   ;;  %s683_s15 = sphi %s728_s15, %s978_s15  }
   0x7   : > { %s753_s21 = sadd.s32 1, %s695_s18   ;;  %s81_s22 = sadd.s32 1, %s691_s17 }
   0x8   : > { %s78_s23 = ssub.s32 %s695_s18, %s753_s21  ;;  %p88_p0 = scmp.ne.s32.totalorder %s691_s17, %s687_s16 }
   0x9   : > { %p79_p1 = scmp.eq.s32.totalorder %s78_s23, 0  ;;  %p89_p2 = scmp.eq.s32.totalorder %s695_s18, 0 }
   0xa   : > { %p94_p3 = scmp.ne.s32.totalorder %s687_s16, %s683_s15  ;;  %p958_p4 = scmp.eq.s32.totalorder %s749_s19, 0 }
   0xb   : > { %s765_s24 = scalar_select %p79_p1, %s691_s17, %s81_s22  }
   0xc   : > { %p767_p5 = por %p89_p2, %p88_p0  ;;  %p773_p6 = por %p958_p4, %p94_p3 }
   0xd   : > { %p957_p7 = scmp.eq.s32.totalorder %s749_s19, 2  ;;  %p145_p8 = scmp.eq.s32.totalorder %s482_s20, 2 }
   0xe   : > { %p531_p9 = scmp.lt.s32.totalorder %s695_s18, 3  ;;  %s179_s29 = sand.u32 1, %s691_s17  }
   0xf   : > { %p781_p10 = por %p957_p7, %p88_p0  ;;  %p785_p11 = por %p145_p8, %p94_p3 }
  0x10   : > { %s486_s30 = sshll.u32 %s695_s18, 7  ;;  %s485_s5 = sshll.u32 %s179_s29, 3 }
  0x11   : > { %s962_s27 = scalar_select %p781_p10, 1, 0 }
  0x12   : > { %s963_s28 = scalar_select %p785_p11, 1, 0 }
  0x13   : > { %s794_s8 = scalar_lea.hbm %s954_s2, %s486_s30  ;;  %s183_s9 = scalar_lea.vmem [#allocation3], %s485_s5 }
  0x14   : > { %s190_s10 = sshll.u32 %s183_s9, 4  ;;  %p798_p12 = pnand %p531_p9, %p767_p5  ;;  %s802_s10 = int_to_ptr.vmem [resolvable:$true] %s190_s10 }
  0x15   : > { %s180_s12 = scalar_lea.sflag [#allocation4], %s179_s29  ;;  %s583_s13 = scalar_lea.hbm %s794_s8, 128 }
  0x16   : > { %p584_p1 = scmp.ne.s32.totalorder %s794_s8, %s583_s13  ;;  %p585_p2 = pneg %p798_p12 }
  0x17   : > { %s588_s22 = scalar_lea.hbm %s954_s2, 384  ;;  %p589_p5 = scmp.lt.u32.totalorder %s794_s8, %s954_s2 }
  0x18   : > { %p586_p3 = pnand %p585_p2, %p584_p1  ;;  %p590_p9 = scmp.lt.u32.totalorder %s588_s22, %s583_s13 }
  0x19   : > { %p592_p4 = scmp.lt.u32.totalorder %s583_s13, %s794_s8 }
  0x1a   : > { %p587_p8 = pneg %p586_p3  ;;  %p591_p7 = por %p590_p9, %p589_p5 }
  0x1c   : > { %p593_p13 = por %p592_p4, %p591_p7 }
  0x1e   : > { %p594_p0 = pnand %p593_p13, %p587_p8 }
  0x20   : > { %597 = shalt.err (!%p594_p0)
}
  0x21   : > { %s598_s29 = scalar_lea.vmem %s802_s10, 128  ;;  %s697_s30 = smov [#allocation3]  }
  0x22   : > { %p599_p1 = scmp.ne.s32.totalorder %s802_s10, %s598_s29  ;;  %s603_s5 = sshll.u32 %s697_s30, 4  ;;  %s604_s5 = int_to_ptr.vmem [resolvable:$false] %s603_s5 }
  0x23   : > { %s605_s6 = scalar_lea.vmem %s604_s5, 256  ;;  %p606_p10 = scmp.lt.s32.totalorder %s802_s10, %s604_s5 }
  0x24   : > { %p601_p3 = pnand %p599_p1, %p585_p2  ;;  %p607_p5 = scmp.lt.s32.totalorder %s605_s6, %s598_s29 }
  0x26   : > { %p602_p11 = pneg %p601_p3  ;;  %p608_p9 = por %p607_p5, %p606_p10 }
  0x28   : > { %p609_p4 = pnand %p608_p9, %p602_p11 }
  0x2a   : > { %612 = shalt.err (!%p609_p4)
}
  0x2b   : > { %526 = dma.hbm_to_vmem [thread:$0]  (!%p798_p12), %s794_s8, 128, %s802_s10, %s180_s12  }
  0x2c   : > { %p965_p7 = scmp.lt.s32.totalorder %s695_s18, 4  ;;  %p966_p13 = scmp.ge.s32.totalorder %s695_s18, 1 }
  0x2e   : > { %p196_p0 = pnand %p966_p13, %p965_p7 }
  0x2f   : > { %s836_s7 = sand.u32 (!%p196_p0), 1, %s687_s16  }
  0x30   : > { %199 = sbr.rel (%p196_p0) target bundleno = 769 (0x301), region = 32  ;;  %s488_s9 = sshll.u32 (!%p196_p0), %s836_s7, 3 }
  0x31   : > { %s202_s13 = scalar_lea.sflag (!%p196_p0), [#allocation4], %s836_s7  ;;  %s842_s11 = scalar_lea.vmem (!%p196_p0), [#allocation3], %s488_s9 }
  0x37   : > { %670 = dma.done.wait (%p773_p6), %s202_s13, 128  }
  0x38   : > { %672 = vsyncadd (%p773_p6), %s202_s13, 4294967168  ;;  %p238_p10 = scmp.lt.s32.totalorder %s749_s19, 2  ;;  %v698_v0 = vmov 0   ;;  %vm257_vm0 = vcmask 261120   ;;  %v272_v5 = vlaneseq  ;;  %v699_v10 = vmov 0.0   ;;  %s494_s26 = sshll.u32 %s749_s19, 3 }
  0x39   : > { %573 = vset.pattern.permute.xlu1 %v698_v0  ;;  %574 = vset.pattern.permute.xlu0 %v698_v0  ;;  %v301_v18 = vstv %s494_s26  ;;  %v256_v19 = vld [vmem:[%s842_s11] sm:$0xff]  ;;  %vm306_vm3 = vcmask 7168   ;;  %s865_s29 = scalar_lea.vmem [#allocation8], %s488_s9  ;;  %s700_s30 = smov 0.0  }
  0x3a   : > { %s239_s8 = scalar_select %p238_p10, %s749_s19, 2  ;;  %v273_v8 = vand.u32 127, %v272_v5  ;;  %v300_v17 = vshrl.u32 %v272_v5, 7  ;;  %v285_v26 = vmul.f32 0.9, %v256_v19 }
  0x3b   : > { %p967_p6 = scmp.eq.s32.totalorder %s749_s19, 0  ;;  %p969_p12 = scmp.eq.s32.totalorder %s749_s19, 2 }
  0x3c   : > { %s490_s10 = sshll.u32 %s239_s8, 3  ;;  %v302_v21 = vadd.s32 %v301_v18, %v300_v17  ;;  %s500_s11 = sshll.u32 %s749_s19, 7 }
  0x3d   : > { %s241_s20 = scalar_lea.vmem %s952_s0, %s490_s10  ;;  %s245_s25 = scalar_lea.vmem %s953_s1, %s490_s10 }
  0x3e   : > { %v254_v1 = vld [vmem:[%s241_s20] sm:$0xff]  ;;  %vm303_vm2 = vcmp.lt.s32.totalorder %v302_v21, 20  ;;  %511 = sst [smem:[#allocation2]] (%p967_p6), %s700_s30  ;;  %p968_p11 = pmov %p967_p6 }
  0x3f   : > { %v255_v2 = vld [vmem:[%s245_s25] sm:$0xff]  ;;  %v258_v3 = vsel %vm257_vm0, %v254_v1, -inf  ;;  %s304_s5 = sld [smem:[#allocation2]]  ;;  %s888_s12 = scalar_lea.hbm %s956_s4, %s500_s11 }
  0x40   : > { %275 = vperm.xlu1 %573, %v255_v2   ;;  %259 = vmax.xlane.f32.xlu0 %v258_v3  ;;  %512 = sst [smem:[#allocation2 + $0x1]] (%p968_p11), %s700_s30  ;;  %s374_s14 = sshll.u32 %s865_s29, 4  ;;  %s375_s14 = int_to_ptr.vmem [resolvable:$true] %s374_s14 }
  0x41   : > { %s352_s20 = scalar_lea.sflag [#allocation5], %s836_s7  ;;  %s613_s22 = scalar_lea.vmem %s375_s14, 128 }
  0x42   : > { %p614_p2 = scmp.ne.s32.totalorder %s375_s14, %s613_s22  ;;  %p970_p8 = scmp.ne.s32.totalorder %s962_s27, 0 }
  0x43   : > { %s701_s23 = smov [#allocation8]  }
  0x44   : > { %p615_p1 = pnand %p614_p2, %p970_p8  ;;  %s617_s25 = sshll.u32 %s701_s23, 4  ;;  %s618_s25 = int_to_ptr.vmem [resolvable:$false] %s617_s25 }
  0x45   : > { %s619_s26 = scalar_lea.vmem %s618_s25, 256  ;;  %p620_p5 = scmp.lt.s32.totalorder %s375_s14, %s618_s25 }
  0x46   : > { %p616_p3 = pneg %p615_p1  ;;  %p621_p9 = scmp.lt.s32.totalorder %s619_s26, %s613_s22 }
  0x48   : > { %p622_p4 = por %p621_p9, %p620_p5 }
  0x4a   : > { %p623_p7 = pnand %p622_p4, %p616_p3 }
  0xbf   : > { %v276_v9 = vpop.permute.xlu1 %275 }
  0xc0   : > { %vm277_vm1 = vcmp.eq.s32.totalorder %v273_v8, %v276_v9 }
  0xc1   : > { %v493_v11 = vsel %vm277_vm1, 1.0, %v699_v10 }
  0xc2   : > { %v280_v12 = vmul.f32 %v493_v11, %v254_v1 }
  0xc4   : > { %v281_v15 = vsel %vm257_vm0, %v280_v12, 0.0 }
  0xcd   : > { %v260_v4 = vpop.xlane.xlu0 %259 }
  0xce   : > { %v261_v6 = vsub.f32 %v254_v1, %v260_v4 }
  0xd0   : > { %v262_v7 = vmul.f32 1.442695, %v261_v6 }
  0xd2   : > { %575 = vpow2.f32 %v262_v7 }
  0xdc   : > { %v576_v13 = vpop.eup %575 }
  0xdd   : > { %v264_v14 = vsel %vm257_vm0, %v576_v13, 0.0 }
  0xde   : > { %265 = vadd.xlane.f32.xlu0 %v264_v14 }
  0xe2   : > { %282 = vadd.xlane.f32.xlu0 %v281_v15 }
 0x16b   : > { %v266_v16 = vpop.xlane.xlu0 %265 }
 0x16c   : > { %577 = vlog2.f32 %v266_v16 }
 0x16d   : > { %579 = vrcp.f32 %v266_v16 }
 0x16f   : > { %v283_v24 = vpop.xlane.xlu0 %282 }
 0x176   : > { %v578_v20 = vpop.eup %577 }
 0x177   : > { %v580_v22 = vpop.eup %579  ;;  %v268_v23 = vmul.f32 0.6931472, %v578_v20 }
 0x178   : > { %v271_v25 = vmul.f32 %v580_v22, %v576_v13 }
 0x179   : > { %v269_v27 = vadd.f32 %v268_v23, %v260_v4 }
 0x17a   : > { %v286_v28 = vmul.f32 0.1, %v271_v25 }
 0x17b   : > { %v284_v29 = vsub.f32 %v269_v27, %v283_v24 }
 0x17c   : > { %v287_v30 = vadd.f32 %v286_v28, %v285_v26 }
 0x17d   : > { %v305_v31 = vsel %vm303_vm2, %v284_v29, 0.0 }
 0x17e   : > { %v307_v32 = vsel %vm306_vm3, %v305_v31, 0.0  ;;  %v288_v33 = vmul.f32 %v287_v30, %v271_v25  ;;  %335 = vst.msk [vmem:[%s865_s29] sm:$0xff] %vm257_vm0, %v287_v30 }
 0x17f   : > { %308 = vadd.xlane.f32.xlu0 %v307_v32 }
 0x180   : > { %v289_v34 = vsel %vm257_vm0, %v288_v33, 0.0 }
 0x181   : > { %290 = vadd.xlane.f32.xlu1 %v289_v34 }
 0x20c   : > { %v309_v35 = vpop.xlane.xlu0 %308 }
 0x20d   : > { %v310_v36 = vrot.slane %v309_v35, 4 }
 0x20e   : > { %v291_v37 = vpop.xlane.xlu1 %290 }
 0x20f   : > { %v311_v38 = vadd.f32 %v310_v36, %v309_v35  ;;  %v292_v39 = vsub.f32 1.0, %v291_v37 }
 0x211   : > { %v312_v40 = vrot.slane %v311_v38, 2  ;;  %v293_v41 = vmax.f32 %v292_v39, 1e-08 }
 0x213   : > { %v294_v42 = vmin.f32 %v293_v41, 1.0  ;;  %v313_v43 = vadd.f32 %v312_v40, %v311_v38 }
 0x215   : > { %581 = vlog2.f32 %v294_v42  ;;  %v314_v44 = vrot.slane %v313_v43, 1 }
 0x217   : > { %v315_v45 = vadd.f32 %v314_v44, %v313_v43 }
 0x219   : > { %504 = vpush %v315_v45 }
 0x21f   : > { %v582_v46 = vpop.eup %581 }
 0x220   : > { %v296_v47 = vmul.f32 0.6931472, %v582_v46 }
 0x222   : > { %v297_v48 = vsub.f32 0.0, %v296_v47 }
 0x224   : > { %v321_v49 = vsel %vm303_vm2, %v297_v48, 0.0 }
 0x225   : > { %v322_v50 = vsel %vm306_vm3, %v321_v49, 0.0 }
 0x226   : > { %323 = vadd.xlane.f32.xlu0 %v322_v50 }
 0x24a   : > { %s505_s6 = spop %504 }
 0x24b   : > { %s876_s9 = sadd.f32 %s505_s6, %s304_s5 }
 0x24d   : > { %319 = sst [smem:[#allocation2]] %s876_s9  ;;  %s341_s13 = smul.f32 0.05, %s876_s9 }
 0x24f   : > { %515 = sst [smem:[#allocation7 + $0x1]] (%p969_p12), %s341_s13 }
 0x250   : > { %626 = shalt.err (!%p623_p7)
}
 0x251   : > { %s627_s7 = scalar_lea.hbm %s888_s12, 128  ;;  %s631_s5 = scalar_lea.hbm %s956_s4, 384 }
 0x252   : > { %p628_p13 = scmp.ne.s32.totalorder %s888_s12, %s627_s7  ;;  %p632_p6 = scmp.lt.u32.totalorder %s888_s12, %s956_s4 }
 0x253   : > { %p633_p11 = scmp.lt.u32.totalorder %s631_s5, %s627_s7  ;;  %p635_p2 = scmp.lt.u32.totalorder %s627_s7, %s888_s12 }
 0x254   : > { %p629_p0 = pnand %p628_p13, %p970_p8 }
 0x255   : > { %p634_p12 = por %p633_p11, %p632_p6 }
 0x256   : > { %p630_p10 = pneg %p629_p0 }
 0x257   : > { %p636_p1 = por %p635_p2, %p634_p12 }
 0x259   : > { %p637_p3 = pnand %p636_p1, %p630_p10 }
 0x25b   : > { %640 = shalt.err (!%p637_p3)
}
 0x25c   : > { %519 = dma.vmem_to_hbm [thread:$0]  (%p970_p8), %s375_s14, 128, %s888_s12, %s352_s20  }
 0x25d   : > { %s495_s8 = sld [smem:[#allocation2 + $0x1]]  ;;  %p971_p5 = scmp.eq.s32.totalorder %s749_s19, 2 }
 0x25e   : > { %s641_s20 = scalar_lea.hbm %s955_s3, 16 }
 0x25f   : > { %p972_p8 = pmov %p971_p5  ;;  %p642_p9 = scmp.ne.s32.totalorder %s955_s3, %s641_s20 }
 0x260   : > { %p973_p4 = pmov %p971_p5  ;;  %p647_p0 = scmp.lt.u32.totalorder %s641_s20, %s955_s3 }
 0x262   : > { %p643_p7 = pnand %p642_p9, %p973_p4 }
 0x264   : > { %p644_p13 = pneg %p643_p7 }
 0x266   : > { %p649_p10 = pnand %p647_p0, %p644_p13 }
 0x2b3   : > { %v324_v51 = vpop.xlane.xlu0 %323 }
 0x2b4   : > { %v325_v52 = vrot.slane %v324_v51, 4 }
 0x2b6   : > { %v326_v53 = vadd.f32 %v325_v52, %v324_v51 }
 0x2b8   : > { %v327_v54 = vrot.slane %v326_v53, 2 }
 0x2ba   : > { %v328_v55 = vadd.f32 %v327_v54, %v326_v53 }
 0x2bc   : > { %v329_v56 = vrot.slane %v328_v55, 1 }
 0x2be   : > { %v330_v57 = vadd.f32 %v329_v56, %v328_v55 }
 0x2c0   : > { %506 = vpush %v330_v57 }
 0x2f1   : > { %s507_s10 = spop %506 }
 0x2f2   : > { %s332_s22 = sadd.f32 %s507_s10, %s495_s8 }
 0x2f4   : > { %334 = sst [smem:[#allocation2 + $0x1]] %s332_s22  ;;  %s343_s23 = smul.f32 0.05, %s332_s22 }
 0x2f6   : > { %s344_s27 = sadd.f32 %s343_s23, %s341_s13 }
 0x2f7   : > { %516 = sst [smem:[#allocation7 + $0x2]] (%p971_p5), %s343_s23 }
 0x2f8   : > { %514 = sst [smem:[#allocation7]] (%p972_p8), %s344_s27 }
 0x2f9   : > { %652 = shalt.err (!%p649_p10)
}
 0x2fa   : > { %s702_s9 = smov [#allocation7]   ;;  %p974_p6 = pmov %p973_p4 }
 0x2fb   : > { %p975_p11 = pmov %p973_p4 }
 0x2fc   : > { %518 = dma.smem_to_hbm (%p974_p6), %s702_s9, 16, %s955_s3, [#allocation6]  }
 0x2fd   : > { %674 = dma.done.wait (%p975_p11), [#allocation6], 16   ;;  %p976_p12 = pmov %p973_p4 }
 0x2ff   : > { %676 = vsyncadd (%p976_p12), [#allocation6], 4294967280 }
 0x300   : > { %382 = sfence }
 0x301 PF: > { %p536_p2 = scmp.ge.s32.totalorder %s695_s18, 2  ;;  %s391_s5 = sand.u32 1, %s683_s15  }
 0x302   : > { %p977_p1 = scmp.ne.s32.totalorder %s963_s28, 0  ;;  %s392_s6 = scalar_lea.sflag [#allocation5], %s391_s5 }
 0x304   : > { %p528_p3 = pnand %p536_p2, %p977_p1 }
 0x306   : > { %678 = dma.done.wait (!%p528_p3), %s392_s6, 128  }
 0x307   : > { %680 = vsyncadd (!%p528_p3), %s392_s6, 4294967168  ;;  %p19_p5 = scmp.ge.s32.totalorder %s753_s21, 5   ;;  %s978_s15 = smov %s687_s16 }
 0x308   : > { %s979_s16 = smov %s691_s17  ;;  %s980_s17 = smov %s765_s24 }
 0x309   : > { %s981_s18 = smov %s753_s21  ;;  %21 = sbr.rel (!%p19_p5) target bundleno = 6 (0x6), region = 107 }
 0x310   :  { %397 = vsyncpa [#allocation4], 1 }
 0x311   :  { %399 = vsyncpa [#allocation4 + $0x1], 1 }
 0x312   :  { %400 = vsyncpa [#allocation5], 1 }
 0x313   :  { %402 = vsyncpa [#allocation5 + $0x1], 1 }
 0x314   :  { %403 = vsyncpa [#allocation6], 1 }
 0x315   :  { %405 = vsyncpa [#allocation6 + $0x1], 1 }

</bundles_post_ra>
